<compile_context>
chip_gen: v5e
topology: v5e:2x2
jax: 0.10.0
libtpu: 0.0.40
codegen_flags: <defaults>
</compile_context>

<pallas_src>
import math
from functools import partial

import jax
import jax.numpy as jnp
from jax import lax
from jax.experimental import pallas as pl
from jax.experimental.pallas import tpu as pltpu


def _round_up(x, m):
    return (x + m - 1) // m * m


def _vmem_capacity_bytes():
    # Generation-aware budget: 128 MiB on v5e/v6e, 64 MiB per-TC on v7x.
    try:
        return int(pltpu.get_tpu_info().vmem_capacity_bytes)
    except Exception:
        return 64 * 1024 * 1024  # conservative fallback (v7x per-TC)


# ---------------------------------------------------------------------------
# Path A: bf16 table resident in VMEM, bf16 one-hot MXU gather.
# ---------------------------------------------------------------------------
def _emb_vmem_kernel(ids_ref, table_ref, out_ref, *, scale):
    # ids_ref:   (TOK_BLOCK, 1) int32  -- token ids on the sublane axis (VMEM).
    # table_ref: (vocab, d_model) bf16 -- full table, resident across the grid.
    # out_ref:   (TOK_BLOCK, d_model)  -- lane/sublane-dense output tile.
    tb = out_ref.shape[0]
    vocab = table_ref.shape[0]
    ids_col = ids_ref[...]                                    # (TOK_BLOCK, 1)
    # bf16 one-hot (0/1 exact): half the intermediate bytes / MXU LHS passes
    # of f32, and the selected bf16 row is reproduced exactly in f32 acc.
    one_hot = (ids_col == lax.broadcasted_iota(jnp.int32, (tb, vocab), 1)
               ).astype(jnp.bfloat16)
    rows = jnp.dot(one_hot, table_ref[...], preferred_element_type=jnp.float32)
    out_ref[...] = (rows * scale).astype(out_ref.dtype)


# ---------------------------------------------------------------------------
# Path B: table in HBM, manual overlapped row-gather DMAs straight into the
# output tile (no staging copy).
# ---------------------------------------------------------------------------
def _emb_hbm_kernel(ids_ref, table_ref, out_ref, sem, *,
                    scale, tok_block, n_inflight, unroll):
    # ids_ref:   (1, TOK_BLOCK) int32 in SMEM -- this block's token ids.
    # table_ref: (vocab, d_model) raw HBM ref (memory_space=pl.ANY).
    # out_ref:   (TOK_BLOCK, d_model) VMEM output tile (gather lands here).
    # sem:       (n_inflight,) DMA semaphores -- ring of outstanding copies.

    def start_row(tok, dst, slot):
        pltpu.make_async_copy(
            table_ref.at[pl.ds(tok, 1), :],
            out_ref.at[pl.ds(dst, 1), :],
            sem.at[slot],
        ).start()

    def wait_slot(slot):
        # Only the byte count + semaphore matter for the wait; a fixed
        # (1, d_model) row descriptor matches every ring copy.
        pltpu.make_async_copy(
            table_ref.at[pl.ds(0, 1), :],
            out_ref.at[pl.ds(0, 1), :],
            sem.at[slot],
        ).wait()

    # Prime the DMA ring (statically unrolled issue of the first n_inflight
    # row gathers; n_inflight <= tok_block by construction).
    for t in range(n_inflight):
        start_row(ids_ref[0, t], t, t)

    # Main gather loop: retire copy t, immediately launch copy t + n_inflight
    # on the same semaphore slot.  Unrolled by `unroll` to pack descriptor
    # issues and amortize scalar control.
    @pl.loop(0, tok_block // unroll)
    def _chunk(c):
        for j in range(unroll):
            t = c * unroll + j
            slot = t % n_inflight
            nxt = t + n_inflight
            # Hoist the SMEM id read above the wait (.wait() breaks SMEM
            # sst->sld forwarding); clamp so the block tail never reads OOB.
            tok_next = ids_ref[0, jnp.minimum(nxt, tok_block - 1)]
            wait_slot(slot)

            @pl.when(nxt < tok_block)
            def _():
                start_row(tok_next, nxt, slot)

    # Single in-place scale in f32; Pallas then writes the dense tile back.
    out_ref[...] = (out_ref[...].astype(jnp.float32) * scale
                    ).astype(out_ref.dtype)


# ---------------------------------------------------------------------------
# Wrapper
# ---------------------------------------------------------------------------
def embeddings_forward(token_ids, table, *, tok_block=1024, n_inflight=32,
                       unroll=8, force_hbm_gather=False):
    """Pallas equivalent of Embeddings.forward: lut(x) * sqrt(d_model)."""
    orig_shape = token_ids.shape
    vocab, d_model = table.shape
    n_tok = int(math.prod(orig_shape))
    scale = float(math.sqrt(d_model))
    itemsize = jnp.dtype(table.dtype).itemsize
    row_bytes = d_model * itemsize

    # Flatten ids; clamp so an out-of-range id can never fault a row DMA
    # (valid ids are a precondition of the PyTorch module anyway).
    flat = jnp.clip(token_ids.reshape(n_tok).astype(jnp.int32), 0, vocab - 1)

    # Generation-aware VMEM budget: scoped limit = min(physical/2, 64 MiB)
    # (64 MiB on v5e/v6e, 32 MiB on v7x); half reserved for the
    # double-buffered output tile, the rest for table/one-hot/headroom.
    vmem_cap = _vmem_capacity_bytes()
    vmem_limit = int(min(vmem_cap // 2, 64 * 1024 * 1024))
    tile_budget = vmem_limit // 2

    # Sublane-dense token block: as large as the budget allows (fewer ~600
    # cycle grid steps, bigger writeback DMAs), capped by tok_block.
    tb = max(8, _round_up(min(tok_block, n_tok), 8))
    while tb > 8 and 2 * tb * row_bytes > tile_budget:
        tb = max(8, _round_up(tb // 2, 8))

    n_pad = _round_up(n_tok, tb)
    num_blocks = n_pad // tb
    if n_pad != n_tok:
        flat = jnp.concatenate([flat, jnp.zeros((n_pad - n_tok,), jnp.int32)])

    table_bytes = vocab * d_model * itemsize
    out_bytes = n_pad * row_bytes
    cparams = pltpu.CompilerParams(
        dimension_semantics=("parallel",),           # token blocks independent
        vmem_limit_bytes=vmem_limit)
    out_shape = jax.ShapeDtypeStruct((n_pad, d_model), table.dtype)

    # TODO(synk): if d_model % 128 != 0, fold tokens into lanes and present a
    # (*, 128) lane-dense output slab to avoid masked vst.msk partial stores.

    # Path A only while the one-hot matmul stays under the HBM-writeback
    # roofline (crossover ~240 vocab on v5e .. ~650 on v6e; 512 is a safe
    # universal cap), only for bf16 tables (bit-exact MXU gather), and only if
    # table(x2 buf) + one-hot + output tiles comfortably fit scoped VMEM.
    onehot_bytes = tb * vocab * 2
    path_a_vmem = 2 * table_bytes + onehot_bytes + 2 * tb * row_bytes
    use_vmem_path = (not force_hbm_gather
                     and table.dtype == jnp.bfloat16
                     and vocab <= 512
                     and path_a_vmem <= (3 * vmem_limit) // 4)

    if use_vmem_path:
        cost = pl.CostEstimate(
            flops=2 * n_pad * vocab * d_model + n_pad * d_model,
            transcendentals=0,
            bytes_accessed=table_bytes + out_bytes + n_pad * 4)
        out_flat = pl.pallas_call(
            partial(_emb_vmem_kernel, scale=scale),
            out_shape=out_shape,
            grid_spec=pltpu.PrefetchScalarGridSpec(
                num_scalar_prefetch=0,
                grid=(num_blocks,),
                in_specs=[
                    pl.BlockSpec((tb, 1), lambda i: (i, 0)),            # ids
                    pl.BlockSpec((vocab, d_model), lambda i: (0, 0)),   # table
                ],
                out_specs=pl.BlockSpec((tb, d_model), lambda i: (i, 0)),
            ),
            compiler_params=cparams,
            cost_estimate=cost,
        )(flat.reshape(n_pad, 1), table)
    else:
        k = int(min(n_inflight, tb))
        u = int(max(1, min(unroll, tb)))
        while tb % u:
            u -= 1
        cost = pl.CostEstimate(
            flops=n_pad * d_model,                   # the *sqrt(d_model) scale
            transcendentals=0,
            # Only the gathered rows are read, not the whole table.
            bytes_accessed=n_pad * row_bytes + out_bytes + n_pad * 4)
        out_flat = pl.pallas_call(
            partial(_emb_hbm_kernel, scale=scale, tok_block=tb,
                    n_inflight=k, unroll=u),
            out_shape=out_shape,
            grid_spec=pltpu.PrefetchScalarGridSpec(
                num_scalar_prefetch=0,
                grid=(num_blocks,),
                in_specs=[
                    # Per-block ids in SMEM: O(tb) scalar memory regardless of
                    # total sequence length (no whole-array scalar prefetch).
                    pl.BlockSpec((1, tb), lambda i: (i, 0),
                                 memory_space=pltpu.MemorySpace.SMEM),
                    pl.BlockSpec(memory_space=pl.ANY),          # table in HBM
                ],
                out_specs=pl.BlockSpec((tb, d_model), lambda i: (i, 0)),
                scratch_shapes=[pltpu.SemaphoreType.DMA((k,))],
            ),
            compiler_params=cparams,
            cost_estimate=cost,
        )(flat.reshape(num_blocks, tb), table)

    return out_flat[:n_tok].reshape(*orig_shape, d_model)


if __name__ == "__main__":
    # Shapes consistent with Embeddings(d_model, vocab) applied to (batch, seq)
    # integer token ids.
    d_model = 32
    vocab = 64
    batch, seq = 2, 8

    key = jax.random.PRNGKey(0)
    k_table, k_ids = jax.random.split(key)

    table_f32 = jax.random.normal(k_table, (vocab, d_model), dtype=jnp.float32)
    table_bf16 = table_f32.astype(jnp.bfloat16)
    token_ids = jax.random.randint(k_ids, (batch, seq), 0, vocab,
                                   dtype=jnp.int32)

    scale = math.sqrt(d_model)
    ref_f32 = jnp.take(table_f32, token_ids, axis=0) * scale
    ref_bf16 = (jnp.take(table_bf16, token_ids, axis=0).astype(jnp.float32)
                * scale).astype(jnp.bfloat16)

    # Path A: bf16 table + small vocab -> VMEM-resident one-hot gather.
    out_a = jax.block_until_ready(embeddings_forward(token_ids, table_bf16))
    # Path B forced on the same bf16 table (HBM row-gather DMA ring).
    out_b_bf16 = jax.block_until_ready(
        embeddings_forward(token_ids, table_bf16, force_hbm_gather=True))
    # Path B auto-selected for f32 tables (Path A is bf16-only).
    out_b_f32 = jax.block_until_ready(embeddings_forward(token_ids, table_f32))

    assert out_a.shape == (batch, seq, d_model) and out_a.dtype == jnp.bfloat16
    assert out_b_bf16.shape == (batch, seq, d_model)
    assert out_b_f32.shape == (batch, seq, d_model)
    assert out_b_f32.dtype == jnp.float32

    assert jnp.allclose(out_a.astype(jnp.float32),
                        ref_bf16.astype(jnp.float32), atol=1e-2, rtol=1e-2)
    assert jnp.allclose(out_b_bf16.astype(jnp.float32),
                        ref_bf16.astype(jnp.float32), atol=1e-2, rtol=1e-2)
    assert jnp.allclose(out_b_f32, ref_f32, atol=1e-5, rtol=1e-5)

    print("KERNEL_OK")
</pallas_src>

<mosaic_0001>
module attributes {stable_mosaic.version = 11 : i64} {
  func.func @_emb_vmem_kernel(%arg0: i32, %arg1: memref<16x1xi32, #tpu.memory_space<vmem>>, %arg2: memref<64x32xbf16, #tpu.memory_space<vmem>>, %arg3: memref<16x32xbf16, #tpu.memory_space<vmem>>) attributes {dimension_semantics = [#tpu.dimension_semantics<parallel>], iteration_bounds = array<i64: 1>, scalar_prefetch = 0 : i64, scratch_operands = 0 : i64, tpu.core_type = #tpu.core_type<tc>, window_params = [{transform_indices = @transform_0, window_bounds = array<i64: 16, 1>}, {pipeline_mode = #tpu.pipeline_mode<synchronous>, transform_indices = @transform_1, window_bounds = array<i64: 64, 32>}, {transform_indices = @transform_2, window_bounds = array<i64: 16, 32>}]} {
    %c0 = arith.constant 0 : index
    %c0_0 = arith.constant 0 : index
    %0 = vector.load %arg1[%c0, %c0_0] : memref<16x1xi32, #tpu.memory_space<vmem>>, vector<16x1xi32>
    %1 = tpu.iota {dimensions = array<i32: 1>} : vector<16x64xi32>
    %2 = vector.broadcast %0 : vector<16x1xi32> to vector<16x64xi32>
    %3 = arith.cmpi eq, %2, %1 : vector<16x64xi32>
    %4 = arith.extui %3 : vector<16x64xi1> to vector<16x64xi32>
    %5 = arith.sitofp %4 : vector<16x64xi32> to vector<16x64xf32>
    %6 = arith.truncf %5 : vector<16x64xf32> to vector<16x64xbf16>
    %c0_1 = arith.constant 0 : index
    %c0_2 = arith.constant 0 : index
    %7 = vector.load %arg2[%c0_1, %c0_2] : memref<64x32xbf16, #tpu.memory_space<vmem>>, vector<64x32xbf16>
    %cst = arith.constant dense<0.000000e+00> : vector<16x32xf32>
    %8 = tpu.matmul %6, %7, %cst {dimension_numbers = #tpu.dot_dimension_numbers<[1], [0], [0], [1], [0, 0, 1, 1], [], []>} : vector<16x64xbf16>, vector<64x32xbf16>, vector<16x32xf32> -> vector<16x32xf32>
    %cst_3 = arith.constant 5.65685415 : f32
    %9 = vector.broadcast %cst_3 : f32 to vector<16x32xf32>
    %10 = arith.mulf %8, %9 : vector<16x32xf32>
    %11 = arith.truncf %10 : vector<16x32xf32> to vector<16x32xbf16>
    %c0_4 = arith.constant 0 : index
    %c0_5 = arith.constant 0 : index
    %12 = vector.load %arg3[%c0_4, %c0_5] : memref<16x32xbf16, #tpu.memory_space<vmem>>, vector<16x32xbf16>
    tpu.vector_store %arg3[%c0_4, %c0_5], %11 {strides = array<i32>} : memref<16x32xbf16, #tpu.memory_space<vmem>>, vector<16x32xbf16>,
    return
  }
  func.func @transform_0(%arg0: i32) -> (i32, i32) {
    %c0_i32 = arith.constant 0 : i32
    %c0_i32_0 = arith.constant 0 : i32
    return %arg0, %c0_i32 : i32, i32
  }
  func.func @transform_1(%arg0: i32) -> (i32, i32) {
    %c0_i32 = arith.constant 0 : i32
    %c0_i32_0 = arith.constant 0 : i32
    %c0_i32_1 = arith.constant 0 : i32
    return %c0_i32, %c0_i32_0 : i32, i32
  }
  func.func @transform_2(%arg0: i32) -> (i32, i32) {
    %c0_i32 = arith.constant 0 : i32
    %c0_i32_0 = arith.constant 0 : i32
    return %arg0, %c0_i32 : i32, i32
  }
}

</mosaic_0001>

<bundles_post_ra>
// kernel: tpu_custom_call.1
= control target key start
LH: loop header
LB: loop body
LE: loop exit
PB: predicated region body
PF: predicated region fallthrough
CT: control target
= control target key end

     0   :  { %v160_v2 = vmov 0   ;;  %s201_s0 = inlined_call_operand.vmem [shape: s32[16,1], index: 0, kind: input, shape index: {}]   ;;  %s202_s1 = inlined_call_operand.vmem [shape: bf16[64,32], index: 1, kind: input, shape index: {}]   ;;  %s203_s2 = inlined_call_operand.hbm [shape: bf16[16,32], index: 2, kind: output, shape index: {}]  }
   0x1   :  { %v13_v0 = vld [vmem:[%s201_s0] sm:$0xff]  ;;  %v127_v1 = vld [vmem:[%s202_s1 + $0x18] sm:$0xff]  ;;  %133 = vset.pattern.permute.xlu0 %v160_v2 }
   0x2   :  { %7 = vsyncpa [#allocation3], 0  ;;  %18 = vperm.xlu0 %133, %v13_v0   ;;  %70 = vmatpush.bf16.msra.mxu0 %v127_v1  ;;  %v14_v3 = vld [vmem:[%s201_s0 + $0x8] sm:$0xff]  ;;  %v126_v4 = vld [vmem:[%s202_s1 + $0x10] sm:$0xff]  ;;  %v15_v7 = vlaneseq  ;;  %v161_v11 = vmov 0.0   ;;  %vm62_vm2 = vcmask 523264  }
   0x3   :  { %v125_v5 = vld [vmem:[%s202_s1 + $0x8] sm:$0xff]  ;;  %v124_v6 = vld [vmem:[%s202_s1] sm:$0xff]  ;;  %vm84_vm3 = vcmask 257024   ;;  %s162_s0 = smov [#allocation2]   ;;  %s93_s23 = sshll.u32 %s203_s2, 4  ;;  %s94_s23 = int_to_ptr.hbm [resolvable:$true] %s93_s23 }
   0x4   :  { %v16_v9 = vand.u32 127, %v15_v7  ;;  %s91_s1 = sshll.u32 %s162_s0, 4  ;;  %s163_s24 = smov 64   ;;  %s92_s1 = int_to_ptr.vmem [resolvable:$true] %s91_s1 }
   0x5   :  { %s164_s25 = smov 4  }
   0x6   :  { %71 = vmatpush.bf16.msra.mxu0 %v126_v4 }
   0xa   :  { %21 = vperm.xlu0 %133, %v14_v3   ;;  %72 = vmatpush.bf16.msra.mxu0 %v125_v5 }
   0xe   :  { %73 = vmatpush.bf16.msra.mxu0 %v124_v6 }
  0x74   :  { %v19_v8 = vpop.permute.xlu0 %18 }
  0x75   :  { %vm23_vm0 = vcmp.eq.s32.totalorder %v19_v8, %v16_v9 }
  0x76   :  { %v105_v12 = vsel %vm23_vm0, 1.0, %v161_v11 }
  0x7c   :  { %v22_v10 = vpop.permute.xlu0 %21 }
  0x7d   :  { %vm24_vm1 = vcmp.eq.s32.totalorder %v22_v10, %v16_v9 }
  0x7e   :  { %v106_v13 = vsel %vm24_vm1, 1.0, %v161_v11 }
  0x7f   :  { %v29_v14 = vpack.c.bf16 %v106_v13, %v105_v12 }
  0x81   :  { %123 = vmatmul.msk.bf16.vlgmr.msra.gmra.mxu0 %vm62_vm2, %v29_v14 }
  0xfe   :  { %v75_v15 = vpop.f32.mrf.mxu0 }
  0xff   :  { %v80_v16 = vmul.f32 5.656854, %v75_v15 }
 0x101   :  { %v82_v17 = vpack.c.bf16 %v80_v16, %v80_v16 }
 0x103   :  { %85 = vst.msk [vmem:[#allocation2] sm:$0xf] %vm84_vm3, %v82_v17 }
 0x106   :  { %v77_v18 = vpop.f32.mrf.mxu0 }
 0x107   :  { %v81_v19 = vmul.f32 5.656854, %v77_v18 }
 0x109   :  { %v83_v20 = vpack.c.bf16 %v81_v19, %v81_v19 }
 0x10b   :  { %86 = vst.msk [vmem:[#allocation2 + $0x4] sm:$0xf] %vm84_vm3, %v83_v20 }
 0x10c   :  { %99 = dma.vmem_to_hbm [thread:$0]  %s92_s1, 128, %s94_s23, [#allocation3], %s163_s24, %s163_s24, %s164_s25  }
 0x10d   :  { %158 = dma.done.wait [#allocation3], 128  }
 0x10e   :  { %159 = vsyncadd [#allocation3], 4294967168 }
 0x10f   :  { %104 = vsyncpa [#allocation3], 1 }

</bundles_post_ra>
